<compile_context>
chip_gen: v7x
topology: tpu7x:2x2x1
jax: 0.10.0
libtpu: 0.0.40
codegen_flags: <defaults>
</compile_context>

<pallas_src>
import functools
import math

import jax
import jax.numpy as jnp
import numpy as np
from jax.experimental import pallas as pl
from jax.experimental.pallas import tpu as pltpu


# ------------------------- pe buffer (host-side) ---------------------------
def build_pe_table(max_seq_len, d_model):
    """Exactly replicates the torch PositionalEncoder registered buffer."""
    pos = np.arange(max_seq_len, dtype=np.float64)[:, None]
    i = np.arange(0, d_model, 2, dtype=np.float64)[None, :]      # even indices
    pe = np.zeros((max_seq_len, d_model), dtype=np.float64)
    pe[:, 0::2] = np.sin(pos / 10000.0 ** (2.0 * i / d_model))
    pe[:, 1::2] = np.cos(pos / 10000.0 ** (2.0 * (i + 1.0) / d_model))
    return jnp.asarray(pe, dtype=jnp.float32)


# --------------------------------- kernel ----------------------------------
def _pe_kernel(x_ref, pe_ref, o_ref, *, scale):
    # x_ref: (B, tc)   pe_ref: (1, tc) -> sublane-broadcast add on the VPU.
    # f32 pe promotes the sum; cast back so bf16/fp16 activations store clean.
    o_ref[...] = (x_ref[...] * scale + pe_ref[...]).astype(o_ref.dtype)


# --------------------------- tiling policy helpers --------------------------
def _divisors(n):
    ds = set()
    d = 1
    while d * d <= n:
        if n % d == 0:
            ds.add(d)
            ds.add(n // d)
        d += 1
    return ds


def _pick_tile(cols, max_tc_elems):
    """Largest divisor of cols that is a multiple of 128 and <= max_tc_elems.

    Falls back to the smallest 128-multiple divisor if none fits (budget is
    then enforced via an explicit vmem_limit_bytes)."""
    if cols % 128 != 0:
        return cols                       # full-extent block is always legal
    m = cols // 128
    cands = sorted(128 * d for d in _divisors(m))
    fitting = [c for c in cands if c <= max_tc_elems]
    return fitting[-1] if fitting else cands[0]


def _vmem_physical_bytes():
    try:
        return int(pltpu.get_tpu_info().vmem_capacity_bytes)
    except Exception:
        return 64 << 20                   # v7x per-TC: smallest current gen


# -------------------------------- wrapper ----------------------------------
def positional_encoder(x, pe_table):
    B, S, D = x.shape
    scale = math.sqrt(D)
    cols = S * D
    itemsize = jnp.dtype(x.dtype).itemsize

    # Fold (seq, d_model) into one lane-dense axis; batch rides the sublanes.
    x2 = x.reshape(B, cols)
    pe2 = pe_table[:S].reshape(1, cols)

    total_bytes = B * cols * itemsize

    # ---- tile selection -----------------------------------------------------
    SMALL = 2 << 20                       # below this, per-step overhead wins
    phys = _vmem_physical_bytes()
    # Stay well under the smallest default scoped VMEM (16 MiB on v5e) and
    # under a quarter of physical so double-buffering is never in question.
    scoped_budget = min(phys // 4, 12 << 20)
    # footprint ~ 2*(x blk) + 2*(out blk) + 2*(pe blk) ~= 4 * x_blk, so cap
    # the per-buffer x block at scoped_budget/4, and keep it in the measured
    # 1-2 MiB HBM-roofline sweet spot.
    max_x_block = min(scoped_budget // 4, 2 << 20)

    if total_bytes <= SMALL:
        tc = cols                         # single grid step, full-extent block
    else:
        max_tc_elems = max(128, max_x_block // (B * itemsize))
        tc = _pick_tile(cols, max_tc_elems)
    grid = (cols // tc,)

    # ---- double-buffered VMEM footprint; raise the scoped limit if needed ---
    x_blk = B * tc * itemsize
    out_blk = B * tc * itemsize
    pe_blk = tc * 4
    footprint = 2 * (x_blk + out_blk + pe_blk)
    ck = {"dimension_semantics": ("parallel",)}
    if footprint + (2 << 20) > (16 << 20):          # may not fit v5e default
        ck["vmem_limit_bytes"] = int(min(phys * 3 // 4,
                                         max(footprint * 2, 16 << 20)))

    out = pl.pallas_call(
        functools.partial(_pe_kernel, scale=scale),
        out_shape=jax.ShapeDtypeStruct((B, cols), x.dtype),
        grid_spec=pltpu.PrefetchScalarGridSpec(
            num_scalar_prefetch=0,
            grid=grid,
            in_specs=[
                pl.BlockSpec((B, tc), lambda i: (0, i)),   # x (folded)
                pl.BlockSpec((1, tc), lambda i: (0, i)),   # pe (shared by batch)
            ],
            out_specs=pl.BlockSpec((B, tc), lambda i: (0, i)),
        ),
        compiler_params=pltpu.CompilerParams(**ck),
    )(x2, pe2)
    return out.reshape(B, S, D)


# ------------------------- pure-JAX reference check -------------------------
def reference(x, pe_table):
    B, S, D = x.shape
    return x * math.sqrt(D) + pe_table[:S][None, :, :]


# --------------------------------- driver ----------------------------------
if __name__ == "__main__":
    B, S, D_MODEL, MAX_SEQ = 2, 8, 32, 512

    key = jax.random.PRNGKey(0)
    x = jax.random.normal(key, (B, S, D_MODEL), jnp.float32)
    pe_table = build_pe_table(MAX_SEQ, D_MODEL)

    out = jax.block_until_ready(positional_encoder(x, pe_table))
    ref = jax.block_until_ready(reference(x, pe_table))

    np.testing.assert_allclose(np.asarray(out), np.asarray(ref),
                               rtol=1e-5, atol=1e-5)
    print("KERNEL_OK")
</pallas_src>

<mosaic_0001>
module attributes {stable_mosaic.version = 11 : i64} {
  func.func @_pe_kernel(%arg0: i32, %arg1: memref<2x256xf32, #tpu.memory_space<vmem>>, %arg2: memref<1x256xf32, #tpu.memory_space<vmem>>, %arg3: memref<2x256xf32, #tpu.memory_space<vmem>>) attributes {dimension_semantics = [#tpu.dimension_semantics<parallel>], iteration_bounds = array<i64: 1>, scalar_prefetch = 0 : i64, scratch_operands = 0 : i64, tpu.core_type = #tpu.core_type<tc>, window_params = [{transform_indices = @transform_0, window_bounds = array<i64: 2, 256>}, {transform_indices = @transform_1, window_bounds = array<i64: 1, 256>}, {transform_indices = @transform_2, window_bounds = array<i64: 2, 256>}]} {
    %c0 = arith.constant 0 : index
    %c0_0 = arith.constant 0 : index
    %0 = vector.load %arg1[%c0, %c0_0] : memref<2x256xf32, #tpu.memory_space<vmem>>, vector<2x256xf32>
    %cst = arith.constant 5.65685415 : f32
    %1 = vector.broadcast %cst : f32 to vector<2x256xf32>
    %2 = arith.mulf %0, %1 : vector<2x256xf32>
    %c0_1 = arith.constant 0 : index
    %c0_2 = arith.constant 0 : index
    %3 = vector.load %arg2[%c0_1, %c0_2] : memref<1x256xf32, #tpu.memory_space<vmem>>, vector<1x256xf32>
    %4 = vector.broadcast %3 : vector<1x256xf32> to vector<2x256xf32>
    %5 = arith.addf %2, %4 : vector<2x256xf32>
    %c0_3 = arith.constant 0 : index
    %c0_4 = arith.constant 0 : index
    %6 = vector.load %arg3[%c0_3, %c0_4] : memref<2x256xf32, #tpu.memory_space<vmem>>, vector<2x256xf32>
    tpu.vector_store %arg3[%c0_3, %c0_4], %5 {strides = array<i32>} : memref<2x256xf32, #tpu.memory_space<vmem>>, vector<2x256xf32>,
    return
  }
  func.func @transform_0(%arg0: i32) -> (i32, i32) {
    %c0_i32 = arith.constant 0 : i32
    %c0_i32_0 = arith.constant 0 : i32
    return %c0_i32, %arg0 : i32, i32
  }
  func.func @transform_1(%arg0: i32) -> (i32, i32) {
    %c0_i32 = arith.constant 0 : i32
    %c0_i32_0 = arith.constant 0 : i32
    return %c0_i32, %arg0 : i32, i32
  }
  func.func @transform_2(%arg0: i32) -> (i32, i32) {
    %c0_i32 = arith.constant 0 : i32
    %c0_i32_0 = arith.constant 0 : i32
    return %c0_i32, %arg0 : i32, i32
  }
}

</mosaic_0001>

<bundles_post_ra>
// kernel: tpu_custom_call.1
= control target key start
LH: loop header
LB: loop body
LE: loop exit
PB: predicated region body
PF: predicated region fallthrough
CT: control target
= control target key end

     0   :  { %7 = vsyncpa [#allocation3], 0  ;;  %s158_s0 = inlined_call_operand.hbm [shape: f32[2,256], index: 0, kind: input, shape index: {}]   ;;  %s159_s1 = inlined_call_operand.vmem [shape: f32[1,256], index: 1, kind: input, shape index: {}]   ;;  %s160_s2 = inlined_call_operand.hbm [shape: f32[2,256], index: 2, kind: output, shape index: {}]  }
   0x1   :  { %8 = vsyncpa [#allocation4], 0  ;;  %s113_s9 = smov [#allocation2]   ;;  %s65_s13 = scalar_lea.hbm %s158_s0, 64 }
   0x2   :  { %s15_s10 = sshll.u32 %s113_s9, 4  ;;  %p66_p0 = scmp.ne.s32.totalorder %s158_s0, %s65_s13  ;;  %s16_s10 = int_to_ptr.vmem [resolvable:$true] %s15_s10 }
   0x3   :  { %p69_p1 = scmp.lt.u32.totalorder %s65_s13, %s158_s0 }
   0x5   :  { %p71_p2 = pnand %p69_p1, %p66_p0 }
   0x7   :  { %74 = shalt.err (!%p71_p2)
}
   0x8   :  { %s75_s18 = scalar_lea.vmem %s16_s10, 64  ;;  %p80_p4 = scmp.lt.s32.totalorder %s16_s10, %s16_s10 }
   0x9   :  { %p76_p3 = scmp.ne.s32.totalorder %s16_s10, %s75_s18  ;;  %p81_p5 = scmp.lt.s32.totalorder %s75_s18, %s75_s18 }
   0xb   :  { %p82_p6 = por %p81_p5, %p80_p4 }
   0xd   :  { %p83_p7 = pnand %p82_p6, %p76_p3 }
   0xf   :  { %86 = shalt.err (!%p83_p7)
}
  0x10   :  { %18 = dma.hbm_to_vmem [thread:$0]  %s158_s0, 64, %s16_s10, [#allocation3]  }
  0x11   :  { %109 = dma.done.wait [#allocation3], 64  }
  0x12   :  { %110 = vsyncadd [#allocation3], 4294967232  ;;  %v28_v0 = vlaneseq  ;;  %v114_v1 = vmov 1983009808   ;;  %v24_v7 = vld [vmem:[#allocation2] sm:$0xf] }
  0x13   :  { %v38_v2 = vunpack.c.l.s4 %v114_v1  ;;  %v26_v8 = vld [vmem:[%s159_s1] sm:$0x3]  ;;  %v25_v12 = vmul.f32 5.656854, %v24_v7  ;;  %s115_s0 = smov [#allocation5]  }
  0x14   :  { %v29_v3 = vshrl.u32 %v28_v0, 7  ;;  %s53_s23 = sshll.u32 %s115_s0, 4  ;;  %s54_s23 = int_to_ptr.vmem [resolvable:$true] %s53_s23 }
  0x15   :  { %v39_v6 = vunpack.c.0.s8 %v38_v2  ;;  %s87_s24 = scalar_lea.vmem %s54_s23, 64  ;;  %p92_p9 = scmp.lt.s32.totalorder %s54_s23, %s54_s23 }
  0x16   :  { %v30_v4 = vsub.s32 0, %v29_v3  ;;  %v34_v5 = vsub.s32 1, %v29_v3  ;;  %p88_p8 = scmp.ne.s32.totalorder %s54_s23, %s87_s24  ;;  %p93_p10 = scmp.lt.s32.totalorder %s87_s24, %s87_s24 }
  0x17   :  { %v42_v11 = vsub.s32 %v39_v6, %v29_v3 }
  0x18   :  { %v31_v9 = vrot.slane %v26_v8, %v30_v4  ;;  %v35_v10 = vrot.slane %v26_v8, %v34_v5  ;;  %p94_p11 = por %p93_p10, %p92_p9 }
  0x1a   :  { %v36_v13 = vcombine.low %v31_v9, %v35_v10  ;;  %p95_p12 = pnand %p94_p11, %p88_p8 }
  0x1c   :  { %v43_v14 = vrot.slane %v36_v13, %v42_v11 }
  0x1e   :  { %v45_v15 = vadd.f32 %v43_v14, %v25_v12 }
  0x20   :  { %46 = vst [vmem:[#allocation5] sm:$0xf] %v45_v15 }
  0x21   :  { %98 = shalt.err (!%p95_p12)
}
  0x22   :  { %s99_s26 = scalar_lea.hbm %s160_s2, 64 }
  0x23   :  { %p100_p13 = scmp.ne.s32.totalorder %s160_s2, %s99_s26  ;;  %p103_p0 = scmp.lt.u32.totalorder %s99_s26, %s160_s2 }
  0x25   :  { %p105_p1 = pnand %p103_p0, %p100_p13 }
  0x27   :  { %108 = shalt.err (!%p105_p1)
}
  0x28   :  { %56 = dma.vmem_to_hbm [thread:$0]  %s54_s23, 64, %s160_s2, [#allocation4]  }
  0x29   :  { %111 = dma.done.wait [#allocation4], 64  }
  0x2a   :  { %112 = vsyncadd [#allocation4], 4294967232 }
  0x2b   :  { %60 = vsyncpa [#allocation3], 1 }
  0x2c   :  { %61 = vsyncpa [#allocation4], 1 }

</bundles_post_ra>
